<compile_context>
chip_gen: v7x
topology: tpu7x:2x2x1
jax: 0.10.0
libtpu: 0.0.40
codegen_flags: <defaults>
</compile_context>

<pallas_src>
import jax
import jax.numpy as jnp
from jax.experimental import pallas as pl
from jax.experimental.pallas import tpu as pltpu


_EPS = 1e-6          # matches nn.CosineSimilarity(dim=1, eps=1e-6)
_LANE = 128
_MAX_TILE_B = 8192   # beyond this, per-step overhead is already fully amortized


def _round_up(x, m):
    return ((x + m - 1) // m) * m


def _pick_tile_and_vmem(batch, feat_dims, proj_dims):
    """VMEM-budget-derived batch tile + scoped-VMEM limit (per TPU generation)."""
    try:
        vmem_cap = int(pltpu.get_tpu_info().vmem_capacity_bytes)
    except Exception:
        vmem_cap = 64 * 1024 * 1024            # conservative fallback (v7x-sized)
    vmem_limit = min((vmem_cap * 3) // 4, 100 * 1024 * 1024)
    budget = (vmem_limit * 3) // 5             # headroom for compiler scratch

    # Batch-independent bytes: per-group weight block, double-buffered, bf16.
    resident = sum(2 * f * _round_up(n, _LANE) * 2
                   for f, n in zip(feat_dims, proj_dims))
    # Bytes per batch row held in VMEM:
    per_row = 0
    #  q & t feature tiles (per group), double-buffered, bf16, lane-padded
    per_row += sum(2 * 2 * _round_up(f, _LANE) * 2 for f in feat_dims)
    #  (tile_b, 1) f32 output block, lane-padded, double-buffered
    per_row += 2 * _LANE * 4
    #  ~4 concurrently-live f32 projection temporaries inside the kernel body
    per_row += 4 * max(_round_up(n, _LANE) for n in proj_dims) * 4

    tile_b = max((budget - resident) // per_row, 8)
    tile_b = min(tile_b, _MAX_TILE_B)
    if batch >= 2048:
        # Keep >= 2 grid steps so the "parallel" batch axis can shard across
        # TensorCores on multi-TC chips (v7x); harmless on 1-TC v5e/v6e.
        tile_b = min(tile_b, _round_up(pl.cdiv(batch, 2), 8))
    if tile_b >= batch:
        tile_b = batch                         # single full-array block
    else:
        tile_b = max((tile_b // 8) * 8, 8)     # sublane-aligned, ragged last tile
    return tile_b, int(vmem_limit)


# ----------------------------- Pallas kernel -------------------------------- #
def _make_similarity_kernel(n_groups):
    """kernel(q0, t0, q1, t1, ..., w0, w1, ..., out)."""
    def kernel(*refs):
        out_ref = refs[-1]
        feat_refs = refs[:2 * n_groups]
        w_refs = refs[2 * n_groups:3 * n_groups]
        dot = qn2 = tn2 = None
        for g in range(n_groups):
            w = w_refs[g][...]
            # MXU projections, f32 accumulation.  Zero-padded output lanes of
            # the weights contribute nothing to the reductions below.
            qp = jnp.dot(feat_refs[2 * g][...], w,
                         preferred_element_type=jnp.float32)
            tp = jnp.dot(feat_refs[2 * g + 1][...], w,
                         preferred_element_type=jnp.float32)
            # Cosine over the (virtual) concatenation = sum of per-group partials.
            d = jnp.sum(qp * tp, axis=1, keepdims=True)
            q2 = jnp.sum(qp * qp, axis=1, keepdims=True)
            t2 = jnp.sum(tp * tp, axis=1, keepdims=True)
            dot = d if dot is None else dot + d
            qn2 = q2 if qn2 is None else qn2 + q2
            tn2 = t2 if tn2 is None else tn2 + t2
        # dot / (max(||q||,eps) * max(||t||,eps)); no qn2*tn2 product (overflow-safe).
        inv = (jax.lax.rsqrt(jnp.maximum(qn2, _EPS * _EPS)) *
               jax.lax.rsqrt(jnp.maximum(tn2, _EPS * _EPS)))
        out_ref[...] = (dot * inv).astype(out_ref.dtype)
    return kernel


def similarity_pallas(q_feats, t_feats, weights, tile_b_override=None):
    """q_feats/t_feats: per-group [B, F_g] bf16 features; weights: per-group
    [F_g, Npad_g] bf16 projections (output lanes zero-padded to 128).
    Returns cosine similarity of the concatenated projections, shape [B] f32."""
    n_groups = len(weights)
    B = int(q_feats[0].shape[0])
    feat_dims = [int(q.shape[1]) for q in q_feats]
    proj_dims = [int(w.shape[1]) for w in weights]

    tile_b, vmem_limit = _pick_tile_and_vmem(B, feat_dims, proj_dims)
    if tile_b_override is not None:
        tile_b = min(int(tile_b_override), B)
    grid = (pl.cdiv(B, tile_b),)

    in_specs = []
    operands = []
    for g in range(n_groups):
        fdim = feat_dims[g]
        in_specs.append(pl.BlockSpec((tile_b, fdim), lambda i: (i, 0)))  # q_g
        in_specs.append(pl.BlockSpec((tile_b, fdim), lambda i: (i, 0)))  # t_g
        operands.append(q_feats[g])
        operands.append(t_feats[g])
    for g in range(n_groups):
        in_specs.append(pl.BlockSpec((feat_dims[g], proj_dims[g]),
                                     lambda i: (0, 0)))                   # w_g resident
        operands.append(weights[g])

    out = pl.pallas_call(
        _make_similarity_kernel(n_groups),
        out_shape=jax.ShapeDtypeStruct((B, 1), jnp.float32),
        grid=grid,
        in_specs=in_specs,
        out_specs=pl.BlockSpec((tile_b, 1), lambda i: (i, 0)),
        compiler_params=pltpu.CompilerParams(
            dimension_semantics=("parallel",),
            vmem_limit_bytes=vmem_limit,
        ),
    )(*operands)
    return out[:, 0]


# ------------------------------- glue (JAX) ---------------------------------- #
def embed_and_pool(token_ids, emb_table, out_dtype=jnp.bfloat16):
    # Embedding lookup + mean pool over the token axis (plain-JAX glue).  The
    # bf16 cast is folded into the pooling epilogue (under jit), so the pooled
    # features are written to HBM once, already in kernel input precision.
    # TODO(synk): SentenceEncoder/EventEncoder internals are not given in the
    # reference source; this synthetic embed->pool->linear stands in for them.
    vecs = jnp.take(emb_table, token_ids, axis=0)            # [B, L, E]
    return jnp.mean(vecs, axis=1).astype(out_dtype)          # [B, E]


class SimilarityJAX:
    def __init__(self, cfg, key):
        self.use_events = bool(cfg["use_events"])
        k = jax.random.split(key, 4)
        V, E = cfg["vocab_size"], cfg["embed_dim"]
        Ve, Ee = cfg["event_vocab_size"], cfg["event_embed_dim"]
        H, He = cfg["hidden_dim"], cfg["event_hidden_dim"]
        self.sent_emb = jax.random.normal(k[0], (V, E), jnp.float32) * 0.1
        self.sent_w = jax.random.normal(k[1], (E, H), jnp.float32) * 0.1
        self.evt_emb = jax.random.normal(k[2], (Ve, Ee), jnp.float32) * 0.1
        self.evt_w = jax.random.normal(k[3], (Ee, He), jnp.float32) * 0.1

        # Per-group bf16 projections with output lanes zero-padded to a multiple
        # of 128 (unmasked downstream vector ops).  No block-diagonal weight and
        # no runtime feature concat: the kernel accumulates per-group partials.
        def pad_w(w):
            f, n = w.shape
            n_pad = _round_up(n, _LANE)
            wp = jnp.zeros((f, n_pad), jnp.float32).at[:, :n].set(w)
            return wp.astype(jnp.bfloat16)
        self.sent_w_bf16 = pad_w(self.sent_w)
        self.evt_w_bf16 = pad_w(self.evt_w)
        # NOTE: the contraction dim stays at its natural width (E / Ee); padding
        # it to 128 would multiply feature HBM traffic on this mem-bound kernel.
        self._forward = jax.jit(self._forward_impl)

    def _forward_impl(self, q_sent_ids, q_evt_ids, t_sent_ids, t_evt_ids):
        qs = embed_and_pool(q_sent_ids, self.sent_emb)       # [B, E] bf16
        ts = embed_and_pool(t_sent_ids, self.sent_emb)
        if self.use_events:
            qe = embed_and_pool(q_evt_ids, self.evt_emb)     # [B, Ee] bf16
            te = embed_and_pool(t_evt_ids, self.evt_emb)
            return similarity_pallas([qs, qe], [ts, te],
                                     [self.sent_w_bf16, self.evt_w_bf16])
        # use_events=False: never touches event weights / event features.
        return similarity_pallas([qs], [ts], [self.sent_w_bf16])

    def __call__(self, question, technote):
        q_sent_ids, q_evt_ids = question
        t_sent_ids, t_evt_ids = technote
        return self._forward(q_sent_ids, q_evt_ids, t_sent_ids, t_evt_ids)

    # Pure-JAX f32 reference (matches the PyTorch forward) for sanity checking.
    def reference(self, question, technote):
        q_sent_ids, q_evt_ids = question
        t_sent_ids, t_evt_ids = technote
        def pool_f32(ids, emb):
            return jnp.mean(jnp.take(emb, ids, axis=0), axis=1)
        q = pool_f32(q_sent_ids, self.sent_emb) @ self.sent_w
        t = pool_f32(t_sent_ids, self.sent_emb) @ self.sent_w
        if self.use_events:
            qe = pool_f32(q_evt_ids, self.evt_emb) @ self.evt_w
            te = pool_f32(t_evt_ids, self.evt_emb) @ self.evt_w
            q = jnp.concatenate([q, qe], axis=1)
            t = jnp.concatenate([t, te], axis=1)
        dot = jnp.sum(q * t, axis=1)
        denom = jnp.maximum(jnp.linalg.norm(q, axis=1) * jnp.linalg.norm(t, axis=1),
                            _EPS)
        return dot / denom


# --------------------------------- demo -------------------------------------- #
if __name__ == "__main__":
    cfg = dict(use_events=True,
               vocab_size=64, embed_dim=32, hidden_dim=32,
               event_vocab_size=32, event_embed_dim=16, event_hidden_dim=16)

    key = jax.random.PRNGKey(0)
    k_model, k_q, k_t, k_qe, k_te = jax.random.split(key, 5)

    B, L, Le = 2, 8, 4
    q_sent = jax.random.randint(k_q, (B, L), 0, cfg["vocab_size"])
    t_sent = jax.random.randint(k_t, (B, L), 0, cfg["vocab_size"])
    q_evt = jax.random.randint(k_qe, (B, Le), 0, cfg["event_vocab_size"])
    t_evt = jax.random.randint(k_te, (B, Le), 0, cfg["event_vocab_size"])

    # use_events=True path
    model = SimilarityJAX(cfg, k_model)
    out = jax.block_until_ready(model((q_sent, q_evt), (t_sent, t_evt)))
    ref = model.reference((q_sent, q_evt), (t_sent, t_evt))
    assert out.shape == (B,)
    assert bool(jnp.all(jnp.isfinite(out)))
    assert bool(jnp.max(jnp.abs(out - ref)) < 5e-2)  # bf16-input tolerance

    # use_events=False path (sentence-only cosine)
    cfg_ne = dict(cfg, use_events=False)
    model_ne = SimilarityJAX(cfg_ne, k_model)
    out_ne = jax.block_until_ready(model_ne((q_sent, q_evt), (t_sent, t_evt)))
    ref_ne = model_ne.reference((q_sent, q_evt), (t_sent, t_evt))
    assert out_ne.shape == (B,)
    assert bool(jnp.all(jnp.isfinite(out_ne)))
    assert bool(jnp.max(jnp.abs(out_ne - ref_ne)) < 5e-2)

    # Exercise the multi-tile path (ragged last block, no padding) with a
    # forced small tile: B=20, tile_b=16 -> 2 grid steps, last tile masked.
    Bm = 20
    km1, km2 = jax.random.split(jax.random.PRNGKey(1))
    qf = (jax.random.normal(km1, (Bm, cfg["embed_dim"]), jnp.float32) * 0.2
          ).astype(jnp.bfloat16)
    tf = (jax.random.normal(km2, (Bm, cfg["embed_dim"]), jnp.float32) * 0.2
          ).astype(jnp.bfloat16)
    out_m = jax.block_until_ready(
        similarity_pallas([qf], [tf], [model.sent_w_bf16], tile_b_override=16))
    w32 = model.sent_w_bf16.astype(jnp.float32)
    qp = qf.astype(jnp.float32) @ w32
    tp = tf.astype(jnp.float32) @ w32
    ref_m = jnp.sum(qp * tp, axis=1) / jnp.maximum(
        jnp.linalg.norm(qp, axis=1) * jnp.linalg.norm(tp, axis=1), _EPS)
    assert out_m.shape == (Bm,)
    assert bool(jnp.all(jnp.isfinite(out_m)))
    assert bool(jnp.max(jnp.abs(out_m - ref_m)) < 5e-2)

    print("KERNEL_OK")
</pallas_src>

<mosaic_0001>
module attributes {stable_mosaic.version = 11 : i64} {
  func.func @kernel(%arg0: i32, %arg1: memref<2x32xbf16, #tpu.memory_space<vmem>>, %arg2: memref<2x32xbf16, #tpu.memory_space<vmem>>, %arg3: memref<2x16xbf16, #tpu.memory_space<vmem>>, %arg4: memref<2x16xbf16, #tpu.memory_space<vmem>>, %arg5: memref<32x128xbf16, #tpu.memory_space<vmem>>, %arg6: memref<16x128xbf16, #tpu.memory_space<vmem>>, %arg7: memref<2x1xf32, #tpu.memory_space<vmem>>) attributes {dimension_semantics = [#tpu.dimension_semantics<parallel>], iteration_bounds = array<i64: 1>, scalar_prefetch = 0 : i64, scratch_operands = 0 : i64, tpu.core_type = #tpu.core_type<tc>, window_params = [{transform_indices = @transform_0, window_bounds = array<i64: 2, 32>}, {transform_indices = @transform_1, window_bounds = array<i64: 2, 32>}, {transform_indices = @transform_2, window_bounds = array<i64: 2, 16>}, {transform_indices = @transform_3, window_bounds = array<i64: 2, 16>}, {pipeline_mode = #tpu.pipeline_mode<synchronous>, transform_indices = @transform_4, window_bounds = array<i64: 32, 128>}, {pipeline_mode = #tpu.pipeline_mode<synchronous>, transform_indices = @transform_5, window_bounds = array<i64: 16, 128>}, {transform_indices = @transform_6, window_bounds = array<i64: 2, 1>}]} {
    %c0 = arith.constant 0 : index
    %c0_0 = arith.constant 0 : index
    %0 = vector.load %arg5[%c0, %c0_0] : memref<32x128xbf16, #tpu.memory_space<vmem>>, vector<32x128xbf16>
    %c0_1 = arith.constant 0 : index
    %c0_2 = arith.constant 0 : index
    %1 = vector.load %arg1[%c0_1, %c0_2] : memref<2x32xbf16, #tpu.memory_space<vmem>>, vector<2x32xbf16>
    %cst = arith.constant dense<0.000000e+00> : vector<2x128xf32>
    %2 = tpu.matmul %1, %0, %cst {dimension_numbers = #tpu.dot_dimension_numbers<[1], [0], [0], [1], [0, 0, 1, 1], [], []>} : vector<2x32xbf16>, vector<32x128xbf16>, vector<2x128xf32> -> vector<2x128xf32>
    %c0_3 = arith.constant 0 : index
    %c0_4 = arith.constant 0 : index
    %3 = vector.load %arg2[%c0_3, %c0_4] : memref<2x32xbf16, #tpu.memory_space<vmem>>, vector<2x32xbf16>
    %cst_5 = arith.constant dense<0.000000e+00> : vector<2x128xf32>
    %4 = tpu.matmul %3, %0, %cst_5 {dimension_numbers = #tpu.dot_dimension_numbers<[1], [0], [0], [1], [0, 0, 1, 1], [], []>} : vector<2x32xbf16>, vector<32x128xbf16>, vector<2x128xf32> -> vector<2x128xf32>
    %5 = arith.mulf %2, %4 : vector<2x128xf32>
    %cst_6 = arith.constant dense<0.000000e+00> : vector<2xf32>
    %6 = vector.multi_reduction <add>, %5, %cst_6 [1] : vector<2x128xf32> to vector<2xf32>
    %7 = vector.shape_cast %6 : vector<2xf32> to vector<2x1xf32>
    %8 = arith.mulf %2, %2 : vector<2x128xf32>
    %cst_7 = arith.constant dense<0.000000e+00> : vector<2xf32>
    %9 = vector.multi_reduction <add>, %8, %cst_7 [1] : vector<2x128xf32> to vector<2xf32>
    %10 = vector.shape_cast %9 : vector<2xf32> to vector<2x1xf32>
    %11 = arith.mulf %4, %4 : vector<2x128xf32>
    %cst_8 = arith.constant dense<0.000000e+00> : vector<2xf32>
    %12 = vector.multi_reduction <add>, %11, %cst_8 [1] : vector<2x128xf32> to vector<2xf32>
    %13 = vector.shape_cast %12 : vector<2xf32> to vector<2x1xf32>
    %c0_9 = arith.constant 0 : index
    %c0_10 = arith.constant 0 : index
    %14 = vector.load %arg6[%c0_9, %c0_10] : memref<16x128xbf16, #tpu.memory_space<vmem>>, vector<16x128xbf16>
    %c0_11 = arith.constant 0 : index
    %c0_12 = arith.constant 0 : index
    %15 = vector.load %arg3[%c0_11, %c0_12] : memref<2x16xbf16, #tpu.memory_space<vmem>>, vector<2x16xbf16>
    %cst_13 = arith.constant dense<0.000000e+00> : vector<2x128xf32>
    %16 = tpu.matmul %15, %14, %cst_13 {dimension_numbers = #tpu.dot_dimension_numbers<[1], [0], [0], [1], [0, 0, 1, 1], [], []>} : vector<2x16xbf16>, vector<16x128xbf16>, vector<2x128xf32> -> vector<2x128xf32>
    %c0_14 = arith.constant 0 : index
    %c0_15 = arith.constant 0 : index
    %17 = vector.load %arg4[%c0_14, %c0_15] : memref<2x16xbf16, #tpu.memory_space<vmem>>, vector<2x16xbf16>
    %cst_16 = arith.constant dense<0.000000e+00> : vector<2x128xf32>
    %18 = tpu.matmul %17, %14, %cst_16 {dimension_numbers = #tpu.dot_dimension_numbers<[1], [0], [0], [1], [0, 0, 1, 1], [], []>} : vector<2x16xbf16>, vector<16x128xbf16>, vector<2x128xf32> -> vector<2x128xf32>
    %19 = arith.mulf %16, %18 : vector<2x128xf32>
    %cst_17 = arith.constant dense<0.000000e+00> : vector<2xf32>
    %20 = vector.multi_reduction <add>, %19, %cst_17 [1] : vector<2x128xf32> to vector<2xf32>
    %21 = vector.shape_cast %20 : vector<2xf32> to vector<2x1xf32>
    %22 = arith.mulf %16, %16 : vector<2x128xf32>
    %cst_18 = arith.constant dense<0.000000e+00> : vector<2xf32>
    %23 = vector.multi_reduction <add>, %22, %cst_18 [1] : vector<2x128xf32> to vector<2xf32>
    %24 = vector.shape_cast %23 : vector<2xf32> to vector<2x1xf32>
    %25 = arith.mulf %18, %18 : vector<2x128xf32>
    %cst_19 = arith.constant dense<0.000000e+00> : vector<2xf32>
    %26 = vector.multi_reduction <add>, %25, %cst_19 [1] : vector<2x128xf32> to vector<2xf32>
    %27 = vector.shape_cast %26 : vector<2xf32> to vector<2x1xf32>
    %28 = arith.addf %7, %21 : vector<2x1xf32>
    %29 = arith.addf %10, %24 : vector<2x1xf32>
    %30 = arith.addf %13, %27 : vector<2x1xf32>
    %cst_20 = arith.constant 9.99999996E-13 : f32
    %31 = vector.broadcast %cst_20 : f32 to vector<2x1xf32>
    %32 = arith.maximumf %29, %31 : vector<2x1xf32>
    %33 = math.rsqrt %32 : vector<2x1xf32>
    %cst_21 = arith.constant 9.99999996E-13 : f32
    %34 = vector.broadcast %cst_21 : f32 to vector<2x1xf32>
    %35 = arith.maximumf %30, %34 : vector<2x1xf32>
    %36 = math.rsqrt %35 : vector<2x1xf32>
    %37 = arith.mulf %33, %36 : vector<2x1xf32>
    %38 = arith.mulf %28, %37 : vector<2x1xf32>
    %c0_22 = arith.constant 0 : index
    %c0_23 = arith.constant 0 : index
    %39 = vector.load %arg7[%c0_22, %c0_23] : memref<2x1xf32, #tpu.memory_space<vmem>>, vector<2x1xf32>
    tpu.vector_store %arg7[%c0_22, %c0_23], %38 {strides = array<i32>} : memref<2x1xf32, #tpu.memory_space<vmem>>, vector<2x1xf32>,
    return
  }
  func.func @transform_0(%arg0: i32) -> (i32, i32) {
    %c0_i32 = arith.constant 0 : i32
    %c0_i32_0 = arith.constant 0 : i32
    return %arg0, %c0_i32 : i32, i32
  }
  func.func @transform_1(%arg0: i32) -> (i32, i32) {
    %c0_i32 = arith.constant 0 : i32
    %c0_i32_0 = arith.constant 0 : i32
    return %arg0, %c0_i32 : i32, i32
  }
  func.func @transform_2(%arg0: i32) -> (i32, i32) {
    %c0_i32 = arith.constant 0 : i32
    %c0_i32_0 = arith.constant 0 : i32
    return %arg0, %c0_i32 : i32, i32
  }
  func.func @transform_3(%arg0: i32) -> (i32, i32) {
    %c0_i32 = arith.constant 0 : i32
    %c0_i32_0 = arith.constant 0 : i32
    return %arg0, %c0_i32 : i32, i32
  }
  func.func @transform_4(%arg0: i32) -> (i32, i32) {
    %c0_i32 = arith.constant 0 : i32
    %c0_i32_0 = arith.constant 0 : i32
    %c0_i32_1 = arith.constant 0 : i32
    return %c0_i32, %c0_i32_0 : i32, i32
  }
  func.func @transform_5(%arg0: i32) -> (i32, i32) {
    %c0_i32 = arith.constant 0 : i32
    %c0_i32_0 = arith.constant 0 : i32
    %c0_i32_1 = arith.constant 0 : i32
    return %c0_i32, %c0_i32_0 : i32, i32
  }
  func.func @transform_6(%arg0: i32) -> (i32, i32) {
    %c0_i32 = arith.constant 0 : i32
    %c0_i32_0 = arith.constant 0 : i32
    return %arg0, %c0_i32 : i32, i32
  }
}

</mosaic_0001>

<bundles_post_ra>
// kernel: _forward_impl.1
= control target key start
LH: loop header
LB: loop body
LE: loop exit
PB: predicated region body
PF: predicated region fallthrough
CT: control target
= control target key end

     0   :  { %v320_v0 = vmov 0.0   ;;  %vm321_vm0 = vmmov 0   ;;  %vm41_vm1 = vcmask 261120   ;;  %vm151_vm2 = vcmask 130048   ;;  %s391_s4 = inlined_call_operand.vmem [shape: bf16[32,128], index: 4, kind: input, shape index: {}]   ;;  %s392_s5 = inlined_call_operand.vmem [shape: bf16[16,128], index: 5, kind: input, shape index: {}]   ;;  %s393_s0 = inlined_call_operand.vmem [shape: bf16[2,32], index: 0, kind: input, shape index: {}]   ;;  %s394_s1 = inlined_call_operand.vmem [shape: bf16[2,32], index: 1, kind: input, shape index: {}]   ;;  %s395_s2 = inlined_call_operand.vmem [shape: bf16[2,16], index: 2, kind: input, shape index: {}]   ;;  %s396_s3 = inlined_call_operand.vmem [shape: bf16[2,16], index: 3, kind: input, shape index: {}]   ;;  %s397_s6 = inlined_call_operand.vmem [shape: f32[2,1], index: 6, kind: output, shape index: {}]  }
   0x1   :  { %283 = vmatprep.subr.bf16.mxu0 %v320_v0  ;;  %v313_v1 = vld [vmem:[%s391_s4] sm:$0xff]   ;;  %291 = vmatprep.subr.bf16.mxu1 %v320_v0  ;;  %v314_v2 = vld [vmem:[%s391_s4 + $0x8] sm:$0xff]   ;;  %vm130_vm3 = vcmask 1041408   ;;  %vm260_vm4 = vcmask 1024  }
   0x2   :  { %287 = vmatprep.mubr.msk.bf16.mxu0 %vm321_vm0, %v320_v0  ;;  %295 = vmatprep.mubr.msk.bf16.mxu1 %vm321_vm0, %v320_v0  ;;  %v28_v3 = vld [vmem:[%s393_s0] sm:$0x1] }
   0x3   :  { %284 = vmatpush3.bf16.msra.mxu0 %v313_v1  ;;  %292 = vmatpush3.bf16.msra.mxu1 %v313_v1  ;;  %v85_v4 = vld [vmem:[%s394_s1] sm:$0x1] }
   0x4   :  { %285 = vmatprep.subr.bf16.mxu0 %v320_v0  ;;  %293 = vmatprep.subr.bf16.mxu1 %v320_v0  ;;  %v315_v5 = vld [vmem:[%s392_s5] sm:$0xff]  }
   0x5   :  { %v144_v6 = vld [vmem:[%s395_s2] sm:$0x1] }
   0x6   :  { %v195_v7 = vld [vmem:[%s396_s3] sm:$0x1] }
   0x7   :  { %286 = vmatpush3.bf16.msra.mxu0 %v314_v2  ;;  %294 = vmatpush3.bf16.msra.mxu1 %v314_v2 }
   0x8   :  { %299 = vmatprep.subr.bf16.mxu0 %v320_v0  ;;  %305 = vmatprep.subr.bf16.mxu1 %v320_v0 }
   0xa   :  { %288 = vmatmul.mubr.msk.bf16.vlgmr.msra.gmra.mrb[0].mxu0 %vm41_vm1, %v28_v3  ;;  %296 = vmatmul.mubr.msk.bf16.vlgmr.msra.gmra.mrb[0].mxu1 %vm41_vm1, %v85_v4 }
   0xb   :  { %300 = vmatpush3.bf16.msra.mxu0 %v315_v5  ;;  %306 = vmatpush3.bf16.msra.mxu1 %v315_v5 }
   0xc   :  { %301 = vmatprep.mubr.msk.bf16.mxu0 %vm321_vm0, %v320_v0  ;;  %307 = vmatprep.mubr.msk.bf16.mxu1 %vm321_vm0, %v320_v0 }
  0x12   :  { %302 = vmatmul.mubr.msk.bf16.vlgmr.msra.gmra.mrb[4].mxu0 %vm151_vm2, %v144_v6  ;;  %308 = vmatmul.mubr.msk.bf16.vlgmr.msra.gmra.mrb[4].mxu1 %vm151_vm2, %v195_v7 }
  0xdd   :  { %v79_v8 = vpop.f32.mrb[0].mxu0  ;;  %v123_v9 = vpop.f32.mrb[0].mxu1 }
  0xde   :  { %v289_v10 = vpop.f32.mrb[1].mxu0  ;;  %v129_v11 = vmul.f32 %v123_v9, %v79_v8  ;;  %v138_v12 = vmul.f32 %v123_v9, %v123_v9  ;;  %v297_v13 = vpop.f32.mrb[1].mxu1  ;;  %v134_v14 = vmul.f32 %v79_v8, %v79_v8 }
  0xdf   :  { %v82_v15 = vpop.f32.mrb[2].mxu0  ;;  %v126_v16 = vpop.f32.mrb[2].mxu1 }
  0xe0   :  { %v290_v17 = vpop.f32.mrb[3].mxu0  ;;  %v135_v18 = vsel %vm130_vm3, %v134_v14, 0.0  ;;  %v298_v19 = vpop.f32.mrb[3].mxu1  ;;  %v139_v20 = vsel %vm130_vm3, %v138_v12, 0.0  ;;  %v131_v31 = vsel %vm130_vm3, %v129_v11, 0.0 }
  0xe1   :  { %136 = vadd.xlane.f32.xlu0 %v135_v18 }
  0xe5   :  { %140 = vadd.xlane.f32.xlu0 %v139_v20  ;;  %v189_v21 = vpop.f32.mrb[4].mxu0  ;;  %v233_v22 = vpop.f32.mrb[4].mxu1 }
  0xe6   :  { %v303_v23 = vpop.f32.mrb[5].mxu0  ;;  %v239_v24 = vmul.f32 %v233_v22, %v189_v21  ;;  %v247_v25 = vmul.f32 %v233_v22, %v233_v22  ;;  %v309_v26 = vpop.f32.mrb[5].mxu1  ;;  %v243_v27 = vmul.f32 %v189_v21, %v189_v21 }
  0xe7   :  { %v192_v28 = vpop.f32.mrb[6].mxu0  ;;  %v236_v29 = vpop.f32.mrb[6].mxu1 }
  0xe8   :  { %v304_v30 = vpop.f32.mrb[7].mxu0  ;;  %v244_v32 = vsel %vm130_vm3, %v243_v27, 0.0  ;;  %v310_v33 = vpop.f32.mrb[7].mxu1  ;;  %v248_v34 = vsel %vm130_vm3, %v247_v25, 0.0  ;;  %v240_v35 = vsel %vm130_vm3, %v239_v24, 0.0 }
  0xe9   :  { %132 = vadd.xlane.f32.xlu0 %v131_v31  ;;  %245 = vadd.xlane.f32.xlu1 %v244_v32 }
  0xed   :  { %249 = vadd.xlane.f32.xlu1 %v248_v34 }
  0xf1   :  { %241 = vadd.xlane.f32.xlu1 %v240_v35 }
 0x16e   :  { %v137_v36 = vpop.xlane.xlu0 %136 }
 0x172   :  { %v141_v39 = vpop.xlane.xlu0 %140 }
 0x176   :  { %v246_v37 = vpop.xlane.xlu1 %245  ;;  %v133_v47 = vpop.xlane.xlu0 %132 }
 0x177   :  { %v252_v38 = vadd.f32 %v246_v37, %v137_v36 }
 0x179   :  { %v254_v40 = vmax.f32 %v252_v38, 1e-12 }
 0x17a   :  { %v250_v41 = vpop.xlane.xlu1 %249 }
 0x17b   :  { %v253_v42 = vadd.f32 %v250_v41, %v141_v39  ;;  %316 = vrsqrt.f32 %v254_v40 }
 0x17d   :  { %v256_v43 = vmax.f32 %v253_v42, 1e-12 }
 0x17e   :  { %v242_v44 = vpop.xlane.xlu1 %241 }
 0x17f   :  { %318 = vrsqrt.f32 %v256_v43  ;;  %v251_v49 = vadd.f32 %v242_v44, %v133_v47 }
 0x185   :  { %v317_v45 = vpop.eup %316 }
 0x189   :  { %v319_v46 = vpop.eup %318 }
 0x18a   :  { %v258_v48 = vmul.f32 %v319_v46, %v317_v45 }
 0x18c   :  { %v259_v50 = vmul.f32 %v258_v48, %v251_v49 }
 0x18e   :  { %261 = vst.msk [vmem:[%s397_s6] sm:$0x3] %vm260_vm4, %v259_v50 }

</bundles_post_ra>
